<compile_context>
chip_gen: v6e
topology: v6e:2x2x1
jax: 0.10.0
libtpu: 0.0.40
codegen_flags: <defaults>
</compile_context>

<pallas_src>
import functools
import math

import jax
import jax.numpy as jnp
import numpy as np
from jax.experimental import pallas as pl
from jax.experimental.pallas import tpu as pltpu


def _cdiv(a, b):
    return -(-a // b)


# ----------------------------- Pallas kernel --------------------------------
def _cross_relu_kernel(rev_ref, rep_ref, out_ref):
    # rev_ref: (1, tm, 1, L)   RoPE'd review rows @ W[:, :H].T, pre-replicated to L lanes
    # rep_ref: (1, 1, nb, L)   RoPE'd reply rows @ W[:, H:].T + bias, f = L/Ho rows per group
    # out_ref: (1, tm, nb, L)  lane-dense output slab
    # Pure broadcast-add + ReLU: no tile/reshape temps, stores are full 128-lane vst's.
    out_ref[...] = jnp.maximum(rev_ref[...] + rep_ref[...], 0.0).astype(out_ref.dtype)


# --------------------------- tile planning -----------------------------------
def _plan_tiles(B, Nr, Np, Ho, out_itemsize, *, budget_bytes=8 << 20,
                tm_min=64, tm_max=1024):
    """tn-first tile selection.  Returns (L, f, NB_pad, nb, Nr_pad, tm)."""
    L = Ho * 128 // math.gcd(Ho, 128)          # lcm(Ho, 128): lane-aligned group width
    f = L // Ho                                # reply rows per lane-group
    NB = _cdiv(Np, f)                          # lane-groups needed to cover Np
    max_elems = max(1, budget_bytes // out_itemsize)

    tm_floor = min(tm_min, Nr)
    if tm_floor * NB * L <= max_elems:
        nb = NB                                # full reply extent in one tile (contiguous writes)
    else:
        nb = (max_elems // (tm_floor * L)) // 8 * 8
        nb = max(8, min(nb, NB))               # keep sublane dim a multiple of 8
    NB_pad = _cdiv(NB, nb) * nb                # pad so nb divides the extent

    tm = max(1, min(Nr, tm_max, max_elems // (nb * L)))

    # v7x has 2 TensorCores: make sure the all-"parallel" grid has >= 2 blocks.
    if B * _cdiv(Nr, tm) * (NB_pad // nb) < 2 and Nr >= 2:
        tm = _cdiv(Nr, 2)
    Nr_pad = _cdiv(Nr, tm) * tm
    return L, f, NB_pad, nb, Nr_pad, tm


# ------------------------ RoPE (matches PyTorch exactly) -----------------------
def _rope(x):
    # interleaved rotary embedding: rot = [-x1, x0, -x3, x2, ...]
    _, S, H = x.shape
    pos = jnp.arange(S, dtype=jnp.float32)[:, None]                 # (S, 1)
    idx = jnp.arange(H // 2, dtype=jnp.float32)                     # (H/2,)
    theta = jnp.power(10000.0, -2.0 * idx / H)                      # (H/2,)
    ang = pos * theta                                               # (S, H/2)
    cos_pos = jnp.repeat(jnp.cos(ang), 2, axis=-1)                  # (S, H)
    sin_pos = jnp.repeat(jnp.sin(ang), 2, axis=-1)                  # (S, H)
    x_rot = jnp.stack([-x[..., 1::2], x[..., ::2]], axis=-1).reshape(x.shape)
    return x * cos_pos + x_rot * sin_pos


# ------------------------------- wrapper -------------------------------------
@functools.partial(jax.jit, static_argnames=("out_dtype",))
def position_wised_table_encoder(review, reply, weight, bias, *, out_dtype=None):
    """review: (B, Nr, H), reply: (B, Np, H), weight: (Ho, 2H) [torch nn.Linear layout],
    bias: (Ho,).  out_dtype (e.g. "bfloat16") halves HBM write traffic if tolerated."""
    B, Nr, H = review.shape
    _, Np, _ = reply.shape
    Ho = weight.shape[0]
    assert H % 2 == 0, "hidden_dim must be even for interleaved RoPE"
    assert weight.shape[1] == 2 * H
    od = jnp.dtype(out_dtype) if out_dtype is not None else review.dtype

    # ---- small pre-work in XLA: RoPE + split projection (bias folded into reply) ----
    rev_r = _rope(review.astype(jnp.float32))                                # (B, Nr, H)
    rep_r = _rope(reply.astype(jnp.float32))                                 # (B, Np, H)
    hi = jax.lax.Precision.HIGHEST
    rev_proj = jnp.einsum("bnh,oh->bno", rev_r, weight[:, :H], precision=hi)            # (B, Nr, Ho)
    rep_proj = jnp.einsum("bnh,oh->bno", rep_r, weight[:, H:], precision=hi) + bias     # (B, Np, Ho)

    L, f, NB_pad, nb, Nr_pad, tm = _plan_tiles(B, Nr, Np, Ho, jnp.dtype(od).itemsize)
    Np_pad = NB_pad * f

    # Review rows: pad + replicate to L lanes wrapper-side (no lane permutes in-kernel).
    rev_pad = jnp.pad(rev_proj, ((0, 0), (0, Nr_pad - Nr), (0, 0)))          # (B, Nr_pad, Ho)
    rev_l = jnp.tile(rev_pad, (1, 1, f))[:, :, None, :]                      # (B, Nr_pad, 1, L)
    # Reply rows: pad + group f rows per L-lane block, bias already folded in.
    rep_pad = jnp.pad(rep_proj, ((0, 0), (0, Np_pad - Np), (0, 0)))          # (B, Np_pad, Ho)
    rep_g = rep_pad.reshape(B, 1, NB_pad, L)                                 # (B, 1, NB_pad, L)

    grid = (B, Nr_pad // tm, NB_pad // nb)

    cost = pl.CostEstimate(
        flops=2 * B * Nr_pad * NB_pad * L,
        transcendentals=0,
        bytes_accessed=B * Nr_pad * NB_pad * L * jnp.dtype(od).itemsize
                       + (B * Nr_pad * L + B * NB_pad * L) * 4,
    )

    out4 = pl.pallas_call(
        _cross_relu_kernel,
        out_shape=jax.ShapeDtypeStruct((B, Nr_pad, NB_pad, L), od),
        grid_spec=pltpu.PrefetchScalarGridSpec(
            num_scalar_prefetch=0,
            grid=grid,
            in_specs=[
                pl.BlockSpec((1, tm, 1, L), lambda b, i, j: (b, i, 0, 0)),
                pl.BlockSpec((1, 1, nb, L), lambda b, i, j: (b, 0, j, 0)),
            ],
            out_specs=pl.BlockSpec((1, tm, nb, L), lambda b, i, j: (b, i, j, 0)),
        ),
        compiler_params=pltpu.CompilerParams(
            dimension_semantics=("parallel", "parallel", "parallel"),
            vmem_limit_bytes=32 * 1024 * 1024),
        cost_estimate=cost,
    )(rev_l, rep_g)

    # (NB_pad, L) -> (Np_pad, Ho) is the same row-major byte order: free reshape,
    # then drop the padded rows/columns.
    return out4.reshape(B, Nr_pad, Np_pad, Ho)[:, :Nr, :Np, :]


# --------------------------- pure-JAX reference -------------------------------
def _forward_ref(review, reply, weight, bias):
    B, Nr, H = review.shape
    _, Np, _ = reply.shape
    rev = _rope(review)
    rep = _rope(reply)
    er = jnp.broadcast_to(rev[:, :, None, :], (B, Nr, Np, H))
    ep = jnp.broadcast_to(rep[:, None, :, :], (B, Nr, Np, H))
    cf = jnp.concatenate([er, ep], axis=-1)
    out = jnp.einsum("bijk,ok->bijo", cf, weight,
                     precision=jax.lax.Precision.HIGHEST) + bias
    return jnp.maximum(out, 0.0)


# ----------------------------------- main -------------------------------------
if __name__ == "__main__":
    B, Nr, Np, H = 2, 8, 16, 32

    key = jax.random.PRNGKey(0)
    k1, k2, k3, k4 = jax.random.split(key, 4)
    review = jax.random.normal(k1, (B, Nr, H), dtype=jnp.float32)
    reply = jax.random.normal(k2, (B, Np, H), dtype=jnp.float32)

    # nn.Linear(2H, H) parameters (uniform +-1/sqrt(fan_in))
    bound = 1.0 / np.sqrt(2 * H)
    weight = jax.random.uniform(k3, (H, 2 * H), jnp.float32, -bound, bound)
    bias = jax.random.uniform(k4, (H,), jnp.float32, -bound, bound)

    out = position_wised_table_encoder(review, reply, weight, bias)
    out = jax.block_until_ready(out)

    ref = _forward_ref(review, reply, weight, bias)
    np.testing.assert_allclose(np.asarray(out), np.asarray(ref), rtol=1e-5, atol=1e-5)

    print("KERNEL_OK")
</pallas_src>

<mosaic_0001>
module attributes {stable_mosaic.version = 11 : i64} {
  func.func @_cross_relu_kernel(%arg0: i32, %arg1: i32, %arg2: i32, %arg3: memref<1x8x1x128xf32, #tpu.memory_space<vmem>>, %arg4: memref<1x1x4x128xf32, #tpu.memory_space<vmem>>, %arg5: memref<1x8x4x128xf32, #tpu.memory_space<vmem>>) attributes {dimension_semantics = [#tpu.dimension_semantics<parallel>, #tpu.dimension_semantics<parallel>, #tpu.dimension_semantics<parallel>], iteration_bounds = array<i64: 2, 1, 1>, scalar_prefetch = 0 : i64, scratch_operands = 0 : i64, tpu.core_type = #tpu.core_type<tc>, window_params = [{transform_indices = @transform_0, window_bounds = array<i64: 1, 8, 1, 128>}, {transform_indices = @transform_1, window_bounds = array<i64: 1, 1, 4, 128>}, {transform_indices = @transform_2, window_bounds = array<i64: 1, 8, 4, 128>}]} {
    %c0 = arith.constant 0 : index
    %c0_0 = arith.constant 0 : index
    %c0_1 = arith.constant 0 : index
    %c0_2 = arith.constant 0 : index
    %0 = vector.load %arg3[%c0, %c0_0, %c0_1, %c0_2] : memref<1x8x1x128xf32, #tpu.memory_space<vmem>>, vector<1x8x1x128xf32>
    %c0_3 = arith.constant 0 : index
    %c0_4 = arith.constant 0 : index
    %c0_5 = arith.constant 0 : index
    %c0_6 = arith.constant 0 : index
    %1 = vector.load %arg4[%c0_3, %c0_4, %c0_5, %c0_6] : memref<1x1x4x128xf32, #tpu.memory_space<vmem>>, vector<1x1x4x128xf32>
    %2 = vector.broadcast %0 : vector<1x8x1x128xf32> to vector<1x8x4x128xf32>
    %3 = vector.broadcast %1 : vector<1x1x4x128xf32> to vector<1x8x4x128xf32>
    %4 = arith.addf %2, %3 : vector<1x8x4x128xf32>
    %cst = arith.constant 0.000000e+00 : f32
    %5 = vector.broadcast %cst : f32 to vector<1x8x4x128xf32>
    %6 = arith.maximumf %4, %5 : vector<1x8x4x128xf32>
    %c0_7 = arith.constant 0 : index
    %c0_8 = arith.constant 0 : index
    %c0_9 = arith.constant 0 : index
    %c0_10 = arith.constant 0 : index
    %7 = vector.load %arg5[%c0_7, %c0_8, %c0_9, %c0_10] : memref<1x8x4x128xf32, #tpu.memory_space<vmem>>, vector<1x8x4x128xf32>
    tpu.vector_store %arg5[%c0_7, %c0_8, %c0_9, %c0_10], %6 {strides = array<i32>} : memref<1x8x4x128xf32, #tpu.memory_space<vmem>>, vector<1x8x4x128xf32>,
    return
  }
  func.func @transform_0(%arg0: i32, %arg1: i32, %arg2: i32) -> (i32, i32, i32, i32) {
    %c0_i32 = arith.constant 0 : i32
    %c0_i32_0 = arith.constant 0 : i32
    %c0_i32_1 = arith.constant 0 : i32
    return %arg0, %arg1, %c0_i32, %c0_i32_0 : i32, i32, i32, i32
  }
  func.func @transform_1(%arg0: i32, %arg1: i32, %arg2: i32) -> (i32, i32, i32, i32) {
    %c0_i32 = arith.constant 0 : i32
    %c0_i32_0 = arith.constant 0 : i32
    %c0_i32_1 = arith.constant 0 : i32
    return %arg0, %c0_i32, %arg2, %c0_i32_0 : i32, i32, i32, i32
  }
  func.func @transform_2(%arg0: i32, %arg1: i32, %arg2: i32) -> (i32, i32, i32, i32) {
    %c0_i32 = arith.constant 0 : i32
    %c0_i32_0 = arith.constant 0 : i32
    return %arg0, %arg1, %arg2, %c0_i32 : i32, i32, i32, i32
  }
}

</mosaic_0001>

<bundles_post_ra>
// kernel: position_wised_table_encoder.1
= control target key start
LH: loop header
LB: loop body
LE: loop exit
PB: predicated region body
PF: predicated region fallthrough
CT: control target
= control target key end

     0   :  { %s499_s9 = smov 0   ;;  %s501_s10 = smov 0   ;;  %s535_s0 = inlined_call_operand.vmem [shape: f32[2,8,1,128], index: 0, kind: input, shape index: {}]   ;;  %s536_s1 = inlined_call_operand.vmem [shape: f32[2,1,4,128], index: 1, kind: input, shape index: {}]   ;;  %s537_s2 = inlined_call_operand.vmem [shape: f32[2,8,4,128], index: 2, kind: output, shape index: {}]  }
   0x1   :  { %s503_s11 = smov 0  }
   0x2 LB: > { %s31_s12 = sadd.s32 1, %s478_s10  ;;  %p420_p0 = scmp.ge.s32.totalorder %s482_s11, 1  ;;  %s482_s11 = sphi %s503_s11, %s12_s11   ;;  %s478_s10 = sphi %s501_s10, %s539_s10   ;;  %s474_s9 = sphi %s499_s9, %s538_s9  }
   0x3   : > { %p33_p1 = scmp.ge.s32.totalorder %s31_s12, 2  ;;  %p155_p2 = scmp.lt.s32.totalorder %s482_s11, 3 }
   0x5   : > { %s541_s12 = smov (%p33_p1, %s31_s12), 0  ;;  %p156_p3 = pnand %p420_p0, %p155_p2 }
   0x6   : > { %p195_p4 = scmp.lt.s32.totalorder (!%p156_p3), %s474_s9, 1 }
   0x7   : > { %159 = sbr.rel (%p156_p3) target bundleno = 25 (0x19), region = 28 }
   0xc   : > { %s543_s9 = smov (!%p195_p4, %s474_s9), 1 }
   0xd   : > { %s421_s13 = sshll.u32 %s543_s9, 3  ;;  %s422_s14 = sshll.u32 %s543_s9, 2 }
   0xe   : > { %s201_s17 = scalar_lea.vmem %s535_s0, %s421_s13  ;;  %s209_s20 = scalar_lea.vmem %s536_s1, %s422_s14 }
   0xf   : > { %s435_s21 = sshll.u32 %s543_s9, 5  ;;  %v425_v0 = vld [vmem:[%s201_s17] ss:$0 sm:$0xff]  ;;  %v426_v3 = vld [vmem:[%s201_s17 + $0x1] ss:$0 sm:$0xff] }
  0x10   : > { %v231_v1 = vld [vmem:[%s209_s20] sm:$0xf]  ;;  %s221_s24 = scalar_lea.vmem %s537_s2, %s435_s21  ;;  %v429_v9 = vld [vmem:[%s201_s17 + $0x4] ss:$0 sm:$0xff]  ;;  %v430_v10 = vld [vmem:[%s201_s17 + $0x5] ss:$0 sm:$0xff] }
  0x11   : > { %v280_v2 = vadd.f32 %v425_v0, %v231_v1  ;;  %v427_v4 = vld [vmem:[%s201_s17 + $0x2] ss:$0 sm:$0xff]  ;;  %v428_v5 = vld [vmem:[%s201_s17 + $0x3] ss:$0 sm:$0xff]  ;;  %v281_v6 = vadd.f32 %v426_v3, %v231_v1  ;;  %v431_v11 = vld [vmem:[%s201_s17 + $0x6] ss:$0 sm:$0xff]  ;;  %v284_v13 = vadd.f32 %v429_v9, %v231_v1  ;;  %v285_v14 = vadd.f32 %v430_v10, %v231_v1 }
  0x12   : > { %v282_v7 = vadd.f32 %v427_v4, %v231_v1  ;;  %v283_v8 = vadd.f32 %v428_v5, %v231_v1  ;;  %v286_v15 = vadd.f32 %v431_v11, %v231_v1  ;;  %v432_v16 = vld [vmem:[%s201_s17 + $0x7] ss:$0 sm:$0xff] }
  0x13   : > { %v288_v12 = vmax.f32 %v280_v2, 0.0  ;;  %v289_v17 = vmax.f32 %v281_v6, 0.0  ;;  %v287_v20 = vadd.f32 %v432_v16, %v231_v1  ;;  %v292_v21 = vmax.f32 %v284_v13, 0.0 }
  0x14   : > { %v290_v18 = vmax.f32 %v282_v7, 0.0  ;;  %v291_v19 = vmax.f32 %v283_v8, 0.0  ;;  %v293_v22 = vmax.f32 %v285_v14, 0.0  ;;  %v294_v23 = vmax.f32 %v286_v15, 0.0 }
  0x15   : > { %296 = vst [vmem:[%s221_s24] sm:$0xf] %v288_v12  ;;  %297 = vst [vmem:[%s221_s24 + $0x4] sm:$0xf] %v289_v17  ;;  %v295_v24 = vmax.f32 %v287_v20, 0.0 }
  0x16   : > { %298 = vst [vmem:[%s221_s24 + $0x8] sm:$0xf] %v290_v18  ;;  %299 = vst [vmem:[%s221_s24 + $0xc] sm:$0xf] %v291_v19 }
  0x17   : > { %300 = vst [vmem:[%s221_s24 + $0x10] sm:$0xf] %v292_v21  ;;  %301 = vst [vmem:[%s221_s24 + $0x14] sm:$0xf] %v293_v22 }
  0x18   : > { %302 = vst [vmem:[%s221_s24 + $0x18] sm:$0xf] %v294_v23  ;;  %303 = vst [vmem:[%s221_s24 + $0x1c] sm:$0xf] %v295_v24 }
  0x19 PF: > { %s12_s11 = sadd.s32 1, %s482_s11   ;;  %s538_s9 = smov %s478_s10 }
  0x1a   : > { %p9_p5 = scmp.ge.s32.totalorder %s12_s11, 4   ;;  %s539_s10 = smov %s541_s12 }
  0x1c   :  { %11 = sbr.rel (!%p9_p5) target bundleno = 2 (0x2), region = 61 }

</bundles_post_ra>
